<compile_context>
chip_gen: v6e
topology: v6e:2x2x1
jax: 0.10.0
libtpu: 0.0.40
codegen_flags: <defaults>
</compile_context>

<pallas_src>
import math

import jax
import jax.numpy as jnp
from jax.experimental import pallas as pl
from jax.experimental.pallas import tpu as pltpu


def cmlp_kernel(x_ref,
                w1_ref, b1_ref,
                w2_ref, b2_ref,
                w3_ref, b3_ref,
                w4_ref, b4_ref,
                o_ref):
    # x_ref: [block_n, in_dim] f32 (untransposed batch tile).
    # w{l}_ref: [out_l, in_l] f32 (PyTorch layout), b{l}_ref: [out_l, 1] f32.
    # Activations are kept [feat, batch] inside the kernel so the batch
    # dimension rides the 128-lane axis (lane-dense VPU work, wide MXU N).
    x = x_ref[...].astype(jnp.bfloat16)                       # [bn, in_dim]

    # Layer 1: contract the feature axis of the untransposed tile directly
    # ("NT" matmul) -> [h1, bn]; f32 accumulation on the MXU.
    h = jax.lax.dot_general(
        w1_ref[...].astype(jnp.bfloat16), x,
        dimension_numbers=(((1,), (1,)), ((), ())),
        preferred_element_type=jnp.float32)
    h = jnp.maximum((h + b1_ref[...]).astype(jnp.bfloat16), 0.0)

    h = jnp.dot(w2_ref[...].astype(jnp.bfloat16), h,
                preferred_element_type=jnp.float32)           # [h2, bn]
    h = jnp.maximum((h + b2_ref[...]).astype(jnp.bfloat16), 0.0)

    h = jnp.dot(w3_ref[...].astype(jnp.bfloat16), h,
                preferred_element_type=jnp.float32)           # [h3, bn]
    h = jnp.maximum((h + b3_ref[...]).astype(jnp.bfloat16), 0.0)

    h = jnp.dot(w4_ref[...].astype(jnp.bfloat16), h,
                preferred_element_type=jnp.float32)           # [out, bn]
    h = jnp.maximum(h + b4_ref[...], 0.0)                     # final ReLU in f32

    # Back to [batch, out_dim] for the store: tiny XLU transpose instead of a
    # standalone XLA transpose pass over the output stream.
    # TODO(synk): optionally emit bf16 output here if the consumer tolerates it.
    o_ref[...] = h.T.astype(o_ref.dtype)


def _round_up(x, m):
    return ((x + m - 1) // m) * m


def _vmem_budget_bytes():
    """Per-generation VMEM budget: ~3/4 of physical VMEM, capped at 96 MiB
    (<= ~48 MiB on v7x's 64 MiB part, ~96 MiB on v5e/v6e's 128 MiB)."""
    try:
        cap = int(pltpu.get_tpu_info().vmem_capacity_bytes)
    except Exception:
        cap = 64 * 1024 * 1024  # conservative (v7x)
    return min(cap * 3 // 4, 96 * 1024 * 1024)


def _estimate_step_vmem(block_n, dims):
    # Double-buffered x/out tiles + (generously, all-f32) live intermediates
    # + weights/biases (double-buffered f32 inputs + in-kernel bf16 copies).
    io = 2 * block_n * (dims[0] + dims[-1]) * 4
    acts = block_n * sum(dims[1:]) * 4
    w_elems = sum(dims[i] * dims[i + 1] + dims[i + 1] for i in range(len(dims) - 1))
    return io + acts + w_elems * (2 * 4 + 2)


def _pick_block_n(B, dims, target, min_steps, vmem_budget):
    target = max(128, _round_up(target, 128))
    block_n = min(target, _round_up(B, 128))

    def halve(bn):
        return max(128, _round_up(bn // 2, 128))

    # Keep at least `min_steps` grid steps (pipelining; v7x megacore) as long
    # as the tile stays reasonably lane-dense (>= 256).
    while block_n > 256 and pl.cdiv(B, block_n) < min_steps:
        block_n = halve(block_n)
    # Respect the VMEM budget (matters when hidden dims grow, esp. on v7x).
    while block_n > 128 and _estimate_step_vmem(block_n, dims) > vmem_budget // 2:
        block_n = halve(block_n)
    return block_n


def cmlp_forward(feat, params, *, block_n_target=2048, min_grid_steps=2):
    """feat: [B, in_dim] float32; params: dict with w{l}: [out,in], b{l}: [out,1]."""
    B, in_dim = feat.shape
    ws = [params[f"w{l}"] for l in range(1, 5)]
    bs = [params[f"b{l}"] for l in range(1, 5)]
    out_dim = ws[-1].shape[0]
    dims = [in_dim] + [w.shape[0] for w in ws]

    vmem_budget = _vmem_budget_bytes()
    block_n = _pick_block_n(B, dims, block_n_target, min_grid_steps, vmem_budget)
    grid = (pl.cdiv(B, block_n),)
    B_out = grid[0] * block_n   # output allocated in whole blocks, sliced to B

    def resident(shape):
        # Whole (tiny) weight/bias tensor, constant index map -> fetched once,
        # VMEM-resident across all grid steps.
        # TODO(synk): for large hidden dims add pipeline_mode=pl.Buffered(1)
        # here to drop the redundant second buffer (halves weight VMEM on v7x).
        return pl.BlockSpec(shape, lambda i: (0,) * len(shape))

    in_specs = [pl.BlockSpec((block_n, in_dim), lambda i: (i, 0))]
    for w, b in zip(ws, bs):
        in_specs.append(resident(w.shape))
        in_specs.append(resident(b.shape))
    out_specs = pl.BlockSpec((block_n, out_dim), lambda i: (i, 0))

    flops = 2 * B * sum(a * b for a, b in zip(dims[:-1], dims[1:]))
    bytes_accessed = (B * in_dim * 4 + B * out_dim * 4
                      + sum(int(w.size) for w in ws) * 4
                      + sum(int(b.size) for b in bs) * 4)
    cost = pl.CostEstimate(flops=flops, transcendentals=0,
                           bytes_accessed=bytes_accessed)

    out = pl.pallas_call(
        cmlp_kernel,
        out_shape=jax.ShapeDtypeStruct((B_out, out_dim), jnp.float32),
        grid=grid,
        in_specs=in_specs,
        out_specs=out_specs,
        compiler_params=pltpu.CompilerParams(
            dimension_semantics=("parallel",),
            vmem_limit_bytes=vmem_budget),
        cost_estimate=cost,
    )(feat, ws[0], bs[0], ws[1], bs[1], ws[2], bs[2], ws[3], bs[3])

    return out if B_out == B else out[:B]


def init_cmlp_params(key, in_dim, hidden_dim_ref, out_dim):
    """Mirror PyTorch init: xavier_normal_(weight, gain=calculate_gain('relu')),
    default nn.Linear bias init U(-1/sqrt(fan_in), 1/sqrt(fan_in)).
    Weights stored [out_features, in_features] (PyTorch layout), bias [out, 1]."""
    gain = math.sqrt(2.0)  # calculate_gain('relu')
    dims = [in_dim, hidden_dim_ref, int(2 * hidden_dim_ref), hidden_dim_ref, out_dim]
    params = {}
    keys = jax.random.split(key, 2 * (len(dims) - 1))
    for li in range(len(dims) - 1):
        fan_in, fan_out = dims[li], dims[li + 1]
        std = gain * math.sqrt(2.0 / (fan_in + fan_out))  # xavier_normal
        w = std * jax.random.normal(keys[2 * li], (fan_out, fan_in), dtype=jnp.float32)
        bound = 1.0 / math.sqrt(fan_in)
        b = jax.random.uniform(keys[2 * li + 1], (fan_out, 1),
                               minval=-bound, maxval=bound, dtype=jnp.float32)
        params[f"w{li+1}"] = w
        params[f"b{li+1}"] = b
    return params


def cmlp_reference(feat, params):
    """Precision-matched reference (bf16 matmul operands, f32 accumulation,
    ReLU after every Linear including the last one, per the PyTorch CMLP spec)."""
    h = feat
    for li in range(1, 5):
        w = params[f"w{li}"].astype(jnp.bfloat16)   # [out, in]
        bias = params[f"b{li}"][:, 0]               # [out]
        z = jnp.dot(h.astype(jnp.bfloat16), w.T,
                    preferred_element_type=jnp.float32) + bias
        h = jnp.maximum(z, 0.0)
    return h


if __name__ == "__main__":
    key = jax.random.PRNGKey(0)
    k_param, k_feat = jax.random.split(key)

    in_dim, hidden_dim_ref, out_dim = 16, 32, 8
    batch = 1000  # not a multiple of the tile -> exercises the partial last block

    params = init_cmlp_params(k_param, in_dim, hidden_dim_ref, out_dim)
    feat = jax.random.normal(k_feat, (batch, in_dim), dtype=jnp.float32)

    out = cmlp_forward(feat, params)
    out = jax.block_until_ready(out)

    ref = cmlp_reference(feat, params)
    assert out.shape == (batch, out_dim)
    assert jnp.allclose(out, ref, atol=1e-2, rtol=1e-2), (
        float(jnp.max(jnp.abs(out - ref))))

    print("KERNEL_OK")
</pallas_src>

<mosaic_0001>
module attributes {stable_mosaic.version = 11 : i64} {
  func.func @cmlp_kernel(%arg0: i32, %arg1: memref<512x16xf32, #tpu.memory_space<vmem>>, %arg2: memref<32x16xf32, #tpu.memory_space<vmem>>, %arg3: memref<32x1xf32, #tpu.memory_space<vmem>>, %arg4: memref<64x32xf32, #tpu.memory_space<vmem>>, %arg5: memref<64x1xf32, #tpu.memory_space<vmem>>, %arg6: memref<32x64xf32, #tpu.memory_space<vmem>>, %arg7: memref<32x1xf32, #tpu.memory_space<vmem>>, %arg8: memref<8x32xf32, #tpu.memory_space<vmem>>, %arg9: memref<8x1xf32, #tpu.memory_space<vmem>>, %arg10: memref<512x8xf32, #tpu.memory_space<vmem>>) attributes {dimension_semantics = [#tpu.dimension_semantics<parallel>], iteration_bounds = array<i64: 2>, scalar_prefetch = 0 : i64, scratch_operands = 0 : i64, tpu.core_type = #tpu.core_type<tc>, window_params = [{transform_indices = @transform_0, window_bounds = array<i64: 512, 16>}, {pipeline_mode = #tpu.pipeline_mode<synchronous>, transform_indices = @transform_1, window_bounds = array<i64: 32, 16>}, {pipeline_mode = #tpu.pipeline_mode<synchronous>, transform_indices = @transform_2, window_bounds = array<i64: 32, 1>}, {pipeline_mode = #tpu.pipeline_mode<synchronous>, transform_indices = @transform_3, window_bounds = array<i64: 64, 32>}, {pipeline_mode = #tpu.pipeline_mode<synchronous>, transform_indices = @transform_4, window_bounds = array<i64: 64, 1>}, {pipeline_mode = #tpu.pipeline_mode<synchronous>, transform_indices = @transform_5, window_bounds = array<i64: 32, 64>}, {pipeline_mode = #tpu.pipeline_mode<synchronous>, transform_indices = @transform_6, window_bounds = array<i64: 32, 1>}, {pipeline_mode = #tpu.pipeline_mode<synchronous>, transform_indices = @transform_7, window_bounds = array<i64: 8, 32>}, {pipeline_mode = #tpu.pipeline_mode<synchronous>, transform_indices = @transform_8, window_bounds = array<i64: 8, 1>}, {transform_indices = @transform_9, window_bounds = array<i64: 512, 8>}]} {
    %c0 = arith.constant 0 : index
    %c0_0 = arith.constant 0 : index
    %0 = vector.load %arg1[%c0, %c0_0] : memref<512x16xf32, #tpu.memory_space<vmem>>, vector<512x16xf32>
    %1 = arith.truncf %0 : vector<512x16xf32> to vector<512x16xbf16>
    %c0_1 = arith.constant 0 : index
    %c0_2 = arith.constant 0 : index
    %2 = vector.load %arg2[%c0_1, %c0_2] : memref<32x16xf32, #tpu.memory_space<vmem>>, vector<32x16xf32>
    %3 = arith.truncf %2 : vector<32x16xf32> to vector<32x16xbf16>
    %cst = arith.constant dense<0.000000e+00> : vector<32x512xf32>
    %4 = tpu.matmul %3, %1, %cst {dimension_numbers = #tpu.dot_dimension_numbers<[1], [1], [0], [0], [0, 0, 1, 0], [], []>} : vector<32x16xbf16>, vector<512x16xbf16>, vector<32x512xf32> -> vector<32x512xf32>
    %c0_3 = arith.constant 0 : index
    %c0_4 = arith.constant 0 : index
    %5 = vector.load %arg3[%c0_3, %c0_4] : memref<32x1xf32, #tpu.memory_space<vmem>>, vector<32x1xf32>
    %6 = vector.broadcast %5 : vector<32x1xf32> to vector<32x512xf32>
    %7 = arith.addf %4, %6 : vector<32x512xf32>
    %8 = arith.truncf %7 : vector<32x512xf32> to vector<32x512xbf16>
    %cst_5 = arith.constant 0.000000e+00 : bf16
    %9 = vector.broadcast %cst_5 : bf16 to vector<32x512xbf16>
    %10 = arith.maximumf %8, %9 : vector<32x512xbf16>
    %c0_6 = arith.constant 0 : index
    %c0_7 = arith.constant 0 : index
    %11 = vector.load %arg4[%c0_6, %c0_7] : memref<64x32xf32, #tpu.memory_space<vmem>>, vector<64x32xf32>
    %12 = arith.truncf %11 : vector<64x32xf32> to vector<64x32xbf16>
    %cst_8 = arith.constant dense<0.000000e+00> : vector<64x512xf32>
    %13 = tpu.matmul %12, %10, %cst_8 {dimension_numbers = #tpu.dot_dimension_numbers<[1], [0], [0], [1], [0, 0, 1, 1], [], []>} : vector<64x32xbf16>, vector<32x512xbf16>, vector<64x512xf32> -> vector<64x512xf32>
    %c0_9 = arith.constant 0 : index
    %c0_10 = arith.constant 0 : index
    %14 = vector.load %arg5[%c0_9, %c0_10] : memref<64x1xf32, #tpu.memory_space<vmem>>, vector<64x1xf32>
    %15 = vector.broadcast %14 : vector<64x1xf32> to vector<64x512xf32>
    %16 = arith.addf %13, %15 : vector<64x512xf32>
    %17 = arith.truncf %16 : vector<64x512xf32> to vector<64x512xbf16>
    %cst_11 = arith.constant 0.000000e+00 : bf16
    %18 = vector.broadcast %cst_11 : bf16 to vector<64x512xbf16>
    %19 = arith.maximumf %17, %18 : vector<64x512xbf16>
    %c0_12 = arith.constant 0 : index
    %c0_13 = arith.constant 0 : index
    %20 = vector.load %arg6[%c0_12, %c0_13] : memref<32x64xf32, #tpu.memory_space<vmem>>, vector<32x64xf32>
    %21 = arith.truncf %20 : vector<32x64xf32> to vector<32x64xbf16>
    %cst_14 = arith.constant dense<0.000000e+00> : vector<32x512xf32>
    %22 = tpu.matmul %21, %19, %cst_14 {dimension_numbers = #tpu.dot_dimension_numbers<[1], [0], [0], [1], [0, 0, 1, 1], [], []>} : vector<32x64xbf16>, vector<64x512xbf16>, vector<32x512xf32> -> vector<32x512xf32>
    %c0_15 = arith.constant 0 : index
    %c0_16 = arith.constant 0 : index
    %23 = vector.load %arg7[%c0_15, %c0_16] : memref<32x1xf32, #tpu.memory_space<vmem>>, vector<32x1xf32>
    %24 = vector.broadcast %23 : vector<32x1xf32> to vector<32x512xf32>
    %25 = arith.addf %22, %24 : vector<32x512xf32>
    %26 = arith.truncf %25 : vector<32x512xf32> to vector<32x512xbf16>
    %cst_17 = arith.constant 0.000000e+00 : bf16
    %27 = vector.broadcast %cst_17 : bf16 to vector<32x512xbf16>
    %28 = arith.maximumf %26, %27 : vector<32x512xbf16>
    %c0_18 = arith.constant 0 : index
    %c0_19 = arith.constant 0 : index
    %29 = vector.load %arg8[%c0_18, %c0_19] : memref<8x32xf32, #tpu.memory_space<vmem>>, vector<8x32xf32>
    %30 = arith.truncf %29 : vector<8x32xf32> to vector<8x32xbf16>
    %cst_20 = arith.constant dense<0.000000e+00> : vector<8x512xf32>
    %31 = tpu.matmul %30, %28, %cst_20 {dimension_numbers = #tpu.dot_dimension_numbers<[1], [0], [0], [1], [0, 0, 1, 1], [], []>} : vector<8x32xbf16>, vector<32x512xbf16>, vector<8x512xf32> -> vector<8x512xf32>
    %c0_21 = arith.constant 0 : index
    %c0_22 = arith.constant 0 : index
    %32 = vector.load %arg9[%c0_21, %c0_22] : memref<8x1xf32, #tpu.memory_space<vmem>>, vector<8x1xf32>
    %33 = vector.broadcast %32 : vector<8x1xf32> to vector<8x512xf32>
    %34 = arith.addf %31, %33 : vector<8x512xf32>
    %cst_23 = arith.constant 0.000000e+00 : f32
    %35 = vector.broadcast %cst_23 : f32 to vector<8x512xf32>
    %36 = arith.maximumf %34, %35 : vector<8x512xf32>
    %37 = tpu.transpose %36, [1, 0] : vector<8x512xf32> -> vector<512x8xf32>
    %c0_24 = arith.constant 0 : index
    %c0_25 = arith.constant 0 : index
    %38 = vector.load %arg10[%c0_24, %c0_25] : memref<512x8xf32, #tpu.memory_space<vmem>>, vector<512x8xf32>
    tpu.vector_store %arg10[%c0_24, %c0_25], %37 {strides = array<i32>} : memref<512x8xf32, #tpu.memory_space<vmem>>, vector<512x8xf32>,
    return
  }
  func.func @transform_0(%arg0: i32) -> (i32, i32) {
    %c0_i32 = arith.constant 0 : i32
    %c0_i32_0 = arith.constant 0 : i32
    return %arg0, %c0_i32 : i32, i32
  }
  func.func @transform_1(%arg0: i32) -> (i32, i32) {
    %c0_i32 = arith.constant 0 : i32
    %c0_i32_0 = arith.constant 0 : i32
    %c0_i32_1 = arith.constant 0 : i32
    return %c0_i32, %c0_i32_0 : i32, i32
  }
  func.func @transform_2(%arg0: i32) -> (i32, i32) {
    %c0_i32 = arith.constant 0 : i32
    %c0_i32_0 = arith.constant 0 : i32
    %c0_i32_1 = arith.constant 0 : i32
    return %c0_i32, %c0_i32_0 : i32, i32
  }
  func.func @transform_3(%arg0: i32) -> (i32, i32) {
    %c0_i32 = arith.constant 0 : i32
    %c0_i32_0 = arith.constant 0 : i32
    %c0_i32_1 = arith.constant 0 : i32
    return %c0_i32, %c0_i32_0 : i32, i32
  }
  func.func @transform_4(%arg0: i32) -> (i32, i32) {
    %c0_i32 = arith.constant 0 : i32
    %c0_i32_0 = arith.constant 0 : i32
    %c0_i32_1 = arith.constant 0 : i32
    return %c0_i32, %c0_i32_0 : i32, i32
  }
  func.func @transform_5(%arg0: i32) -> (i32, i32) {
    %c0_i32 = arith.constant 0 : i32
    %c0_i32_0 = arith.constant 0 : i32
    %c0_i32_1 = arith.constant 0 : i32
    return %c0_i32, %c0_i32_0 : i32, i32
  }
  func.func @transform_6(%arg0: i32) -> (i32, i32) {
    %c0_i32 = arith.constant 0 : i32
    %c0_i32_0 = arith.constant 0 : i32
    %c0_i32_1 = arith.constant 0 : i32
    return %c0_i32, %c0_i32_0 : i32, i32
  }
  func.func @transform_7(%arg0: i32) -> (i32, i32) {
    %c0_i32 = arith.constant 0 : i32
    %c0_i32_0 = arith.constant 0 : i32
    %c0_i32_1 = arith.constant 0 : i32
    return %c0_i32, %c0_i32_0 : i32, i32
  }
  func.func @transform_8(%arg0: i32) -> (i32, i32) {
    %c0_i32 = arith.constant 0 : i32
    %c0_i32_0 = arith.constant 0 : i32
    %c0_i32_1 = arith.constant 0 : i32
    return %c0_i32, %c0_i32_0 : i32, i32
  }
  func.func @transform_9(%arg0: i32) -> (i32, i32) {
    %c0_i32 = arith.constant 0 : i32
    %c0_i32_0 = arith.constant 0 : i32
    return %arg0, %c0_i32 : i32, i32
  }
}

</mosaic_0001>

<bundles_post_ra>
// kernel: tpu_custom_call.1
= control target key start
LH: loop header
LB: loop body
LE: loop exit
PB: predicated region body
PF: predicated region fallthrough
CT: control target
= control target key end

     0   :  { %s1620_s30 = smov 0   ;;  %s2075_s0 = inlined_call_operand.vmem [shape: f32[1000,16], index: 0, kind: input, shape index: {}]   ;;  %s2076_s1 = inlined_call_operand.vmem [shape: f32[32,16], index: 1, kind: input, shape index: {}]   ;;  %s2077_s2 = inlined_call_operand.vmem [shape: f32[32,1], index: 2, kind: input, shape index: {}]   ;;  %s2078_s3 = inlined_call_operand.vmem [shape: f32[64,32], index: 3, kind: input, shape index: {}]   ;;  %s2079_s4 = inlined_call_operand.vmem [shape: f32[64,1], index: 4, kind: input, shape index: {}]   ;;  %s2080_s5 = inlined_call_operand.vmem [shape: f32[32,64], index: 5, kind: input, shape index: {}]   ;;  %s2081_s6 = inlined_call_operand.vmem [shape: f32[32,1], index: 6, kind: input, shape index: {}]   ;;  %s2082_s7 = inlined_call_operand.vmem [shape: f32[8,32], index: 7, kind: input, shape index: {}]   ;;  %s2083_s8 = inlined_call_operand.vmem [shape: f32[8,1], index: 8, kind: input, shape index: {}]   ;;  %s2084_s9 = inlined_call_operand.vmem [shape: f32[1024,8], index: 9, kind: output, shape index: {}]  }
   0x1 LB: > { %s1464_s10 = sadd.s32 4294967295, %s1567_s30   ;;  %p1468_p0 = scmp.ge.s32.totalorder %s1567_s30, 1  ;;  %s1567_s30 = sphi %s1620_s30, %s19_s30  }
   0x2   : > { %p296_p1 = scmp.lt.s32.totalorder %s1567_s30, 3 }
   0x4   : > { %p297_p2 = pnand %p1468_p0, %p296_p1 }
   0x5   : > { %s1628_s11 = sshll.u32 (!%p297_p2), %s1464_s10, 6 }
   0x6   : > { %300 = sbr.rel (%p297_p2) target bundleno = 1220 (0x4c4), region = 56  ;;  %p341_p3 = scmp.lt.s32.totalorder (!%p297_p2), %s1628_s11, 124 }
   0x7   : > { %p351_p4 = scmp.lt.s32.totalorder (!%p297_p2), %s1628_s11, 127 }
   0xb   : > { %v453_v0 = vld [vmem:[%s2076_s1] sm:$0xff]  ;;  %v454_v1 = vld [vmem:[%s2076_s1 + $0x8] sm:$0xff]  ;;  %v1569_v3 = vmov 0   ;;  %v461_v4 = vld [vmem:[%s2077_s2 + $0x10] sm:$0xff]  ;;  %vm483_vm0 = vcmask 130048   ;;  %s342_s20 = scalar_select %p341_p3, %s1628_s11, 124 }
   0xc   : > { %v1637_v2 = vpack.c.bf16 %v454_v1, %v453_v0  ;;  %1559 = vset.pattern.permute.xlu0 %v1569_v3  ;;  %1560 = vset.pattern.permute.xlu1 %v1569_v3  ;;  %v459_v5 = vld [vmem:[%s2077_s2] sm:$0xff]  ;;  %v462_v6 = vld [vmem:[%s2077_s2 + $0x18] sm:$0xff]  ;;  %v460_v7 = vld [vmem:[%s2077_s2 + $0x8] sm:$0xff]  ;;  %vm768_vm1 = vcmask 261120   ;;  %vm989_vm2 = vcmask 523264   ;;  %s2086_s11 = smov (!%p351_p4, %s1628_s11), 127 }
   0xd   : > { %475 = vperm.xlu0 %1559, %v461_v4   ;;  %465 = vperm.xlu1 %1560, %v459_v5   ;;  %s1470_s23 = sshll.u32 %s342_s20, 3  ;;  %v726_v8 = vld [vmem:[%s2079_s4 + $0x30] sm:$0xff]  ;;  %v727_v12 = vld [vmem:[%s2079_s4 + $0x38] sm:$0xff]  ;;  %v724_v22 = vld [vmem:[%s2079_s4 + $0x20] sm:$0xff]  ;;  %s1472_s29 = sshll.u32 %s2086_s11, 3  ;;  %vm1343_vm3 = vcmask 64512  }
   0xe   : > { %1509 = vmatprep.mubr.msk.bf16.mxu0 %vm483_vm0, %v1637_v2  ;;  %1529 = vmatprep.mubr.msk.bf16.mxu1 %vm483_vm0, %v1637_v2  ;;  %s1661_s28 = scalar_lea.vmem %s2075_s0, %s1470_s23  ;;  %v725_v36 = vld [vmem:[%s2079_s4 + $0x28] sm:$0xff]  ;;  %v722_v42 = vld [vmem:[%s2079_s4 + $0x10] sm:$0xff]  ;;  %v723_v45 = vld [vmem:[%s2079_s4 + $0x18] sm:$0xff]  ;;  %s1942_s13 = scalar_lea.vmem %s2084_s9, %s1472_s29 }
   0xf   : > { %v387_v9 = vld [vmem:[%s1661_s28 + $0xf0] sm:$0xff]  ;;  %v388_v10 = vld [vmem:[%s1661_s28 + $0xf8] sm:$0xff]  ;;  %v385_v21 = vld [vmem:[%s1661_s28 + $0xe0] sm:$0xff] }
  0x10   : > { %v419_v11 = vld [vmem:[%s1661_s28 + $0x1f0] sm:$0xff]  ;;  %v436_v13 = vpack.c.bf16 %v388_v10, %v387_v9  ;;  %v420_v14 = vld [vmem:[%s1661_s28 + $0x1f8] sm:$0xff]  ;;  %v386_v24 = vld [vmem:[%s1661_s28 + $0xe8] sm:$0xff] }
  0x11   : > { %480 = vperm.xlu0 %1559, %v462_v6   ;;  %v371_v15 = vld [vmem:[%s1661_s28 + $0x70] sm:$0xff]  ;;  %v372_v16 = vld [vmem:[%s1661_s28 + $0x78] sm:$0xff]  ;;  %470 = vperm.xlu1 %1560, %v460_v7   ;;  %v452_v17 = vpack.c.bf16 %v420_v14, %v419_v11  ;;  %v417_v25 = vld [vmem:[%s1661_s28 + $0x1e0] sm:$0xff]  ;;  %v435_v28 = vpack.c.bf16 %v386_v24, %v385_v21 }
  0x12   : > { %v428_v18 = vpack.c.bf16 %v372_v16, %v371_v15  ;;  %v403_v19 = vld [vmem:[%s1661_s28 + $0x170] sm:$0xff]  ;;  %v404_v20 = vld [vmem:[%s1661_s28 + $0x178] sm:$0xff]  ;;  %1533 = vmatprep.subr.msk.bf16.mxu0 %vm483_vm0, %v436_v13  ;;  %v418_v26 = vld [vmem:[%s1661_s28 + $0x1e8] sm:$0xff] }
  0x13   : > { %v444_v23 = vpack.c.bf16 %v404_v20, %v403_v19  ;;  %1541 = vmatprep.subr.msk.bf16.mxu1 %vm483_vm0, %v452_v17  ;;  %v451_v29 = vpack.c.bf16 %v418_v26, %v417_v25  ;;  %v369_v30 = vld [vmem:[%s1661_s28 + $0x60] sm:$0xff]  ;;  %v370_v31 = vld [vmem:[%s1661_s28 + $0x68] sm:$0xff]  ;;  %v383_v38 = vld [vmem:[%s1661_s28 + $0xd0] sm:$0xff] }
  0x14   : > { %v512_v27 = vsel %vm483_vm0, %v428_v18, 0  ;;  %v401_v32 = vld [vmem:[%s1661_s28 + $0x160] sm:$0xff]  ;;  %v402_v34 = vld [vmem:[%s1661_s28 + $0x168] sm:$0xff]  ;;  %v427_v35 = vpack.c.bf16 %v370_v31, %v369_v30  ;;  %v384_v39 = vld [vmem:[%s1661_s28 + $0xd8] sm:$0xff] }
  0x15   : > { %760 = vperm.xlu0 %1559, %v726_v8   ;;  %1494 = vmatpush3.bf16.xpose.msra.mxu0 %v512_v27  ;;  %v560_v33 = vsel %vm483_vm0, %v444_v23, 0  ;;  %v443_v37 = vpack.c.bf16 %v402_v34, %v401_v32  ;;  %v415_v40 = vld [vmem:[%s1661_s28 + $0x1d0] sm:$0xff]  ;;  %v416_v41 = vld [vmem:[%s1661_s28 + $0x1d8] sm:$0xff]  ;;  %v434_v44 = vpack.c.bf16 %v384_v39, %v383_v38  ;;  %v720_v52 = vld [vmem:[%s2079_s4] sm:$0xff] }
  0x16   : > { %765 = vperm.xlu1 %1560, %v727_v12   ;;  %1514 = vmatpush3.bf16.xpose.msra.mxu1 %v560_v33  ;;  %v509_v43 = vsel %vm483_vm0, %v427_v35, 0  ;;  %v450_v47 = vpack.c.bf16 %v416_v41, %v415_v40  ;;  %v367_v48 = vld [vmem:[%s1661_s28 + $0x50] sm:$0xff]  ;;  %v368_v49 = vld [vmem:[%s1661_s28 + $0x58] sm:$0xff]  ;;  %v721_v54 = vld [vmem:[%s2079_s4 + $0x8] sm:$0xff] }
  0x17   : > { %1534 = vmatprep.subr.msk.bf16.mxu0 %vm483_vm0, %v435_v28  ;;  %1542 = vmatprep.subr.msk.bf16.mxu1 %vm483_vm0, %v451_v29  ;;  %v557_v46 = vsel %vm483_vm0, %v443_v37, 0  ;;  %v399_v50 = vld [vmem:[%s1661_s28 + $0x150] sm:$0xff]  ;;  %v400_v51 = vld [vmem:[%s1661_s28 + $0x158] sm:$0xff]  ;;  %v426_v53 = vpack.c.bf16 %v368_v49, %v367_v48  ;;  %v381_v56 = vld [vmem:[%s1661_s28 + $0xc0] sm:$0xff] }
  0x18   : > { %v442_v55 = vpack.c.bf16 %v400_v51, %v399_v50  ;;  %v382_v57 = vld [vmem:[%s1661_s28 + $0xc8] sm:$0xff]  ;;  %v413_v58 = vld [vmem:[%s1661_s28 + $0x1c0] sm:$0xff]  ;;  %v967_v60 = vld [vmem:[%s2081_s6 + $0x10] sm:$0xff] }
  0x19   : > { %750 = vperm.xlu0 %1559, %v724_v22   ;;  %v414_v59 = vld [vmem:[%s1661_s28 + $0x1c8] sm:$0xff]  ;;  %v506_v61 = vsel %vm483_vm0, %v426_v53, 0  ;;  %v433_v62 = vpack.c.bf16 %v382_v57, %v381_v56  ;;  %v968_v63 = vld [vmem:[%s2081_s6 + $0x18] sm:$0xff]  ;;  %v365_v4 = vld [vmem:[%s1661_s28 + $0x40] sm:$0xff] }
  0x1a   : > { %755 = vperm.xlu1 %1560, %v725_v36   ;;  %v554_v0 = vsel %vm483_vm0, %v442_v55, 0  ;;  %v449_v1 = vpack.c.bf16 %v414_v59, %v413_v58  ;;  %v366_v5 = vld [vmem:[%s1661_s28 + $0x48] sm:$0xff]  ;;  %v397_v6 = vld [vmem:[%s1661_s28 + $0x140] sm:$0xff]  ;;  %v379_v12 = vld [vmem:[%s1661_s28 + $0xb0] sm:$0xff] }
  0x1b   : > { %v398_v7 = vld [vmem:[%s1661_s28 + $0x148] sm:$0xff]  ;;  %v965_v8 = vld [vmem:[%s2081_s6] sm:$0xff]  ;;  %v425_v9 = vpack.c.bf16 %v366_v5, %v365_v4  ;;  %v380_v13 = vld [vmem:[%s1661_s28 + $0xb8] sm:$0xff] }
  0x1c   : > { %v966_v10 = vld [vmem:[%s2081_s6 + $0x8] sm:$0xff]  ;;  %v441_v11 = vpack.c.bf16 %v398_v7, %v397_v6  ;;  %v411_v14 = vld [vmem:[%s1661_s28 + $0x1b0] sm:$0xff]  ;;  %v412_v15 = vld [vmem:[%s1661_s28 + $0x1b8] sm:$0xff]  ;;  %v432_v18 = vpack.c.bf16 %v380_v13, %v379_v12 }
  0x1d   : > { %740 = vperm.xlu0 %1559, %v722_v42   ;;  %1496 = vmatpush3.bf16.xpose.msra.mxu0 %v509_v43  ;;  %v1120_v16 = vld [vmem:[%s2083_s8] sm:$0xff]  ;;  %v503_v17 = vsel %vm483_vm0, %v425_v9, 0  ;;  %v448_v20 = vpack.c.bf16 %v412_v15, %v411_v14  ;;  %v363_v21 = vld [vmem:[%s1661_s28 + $0x30] sm:$0xff]  ;;  %v364_v22 = vld [vmem:[%s1661_s28 + $0x38] sm:$0xff] }
  0x1e   : > { %745 = vperm.xlu1 %1560, %v723_v45   ;;  %1516 = vmatpush3.bf16.xpose.msra.mxu1 %v557_v46  ;;  %v551_v19 = vsel %vm483_vm0, %v441_v11, 0  ;;  %v395_v23 = vld [vmem:[%s1661_s28 + $0x130] sm:$0xff]  ;;  %v396_v24 = vld [vmem:[%s1661_s28 + $0x138] sm:$0xff]  ;;  %v424_v25 = vpack.c.bf16 %v364_v22, %v363_v21  ;;  %v377_v27 = vld [vmem:[%s1661_s28 + $0xa0] sm:$0xff] }
  0x1f   : > { %1535 = vmatprep.subr.msk.bf16.mxu0 %vm483_vm0, %v434_v44  ;;  %1543 = vmatprep.subr.msk.bf16.mxu1 %vm483_vm0, %v450_v47  ;;  %v440_v26 = vpack.c.bf16 %v396_v24, %v395_v23  ;;  %v378_v28 = vld [vmem:[%s1661_s28 + $0xa8] sm:$0xff]  ;;  %v409_v29 = vld [vmem:[%s1661_s28 + $0x1a0] sm:$0xff]  ;;  %v375_v41 = vld [vmem:[%s1661_s28 + $0x90] sm:$0xff] }
  0x20   : > { %v410_v30 = vld [vmem:[%s1661_s28 + $0x1a8] sm:$0xff]  ;;  %v500_v31 = vsel %vm483_vm0, %v424_v25, 0  ;;  %v431_v32 = vpack.c.bf16 %v378_v28, %v377_v27  ;;  %v361_v35 = vld [vmem:[%s1661_s28 + $0x20] sm:$0xff]  ;;  %v376_v42 = vld [vmem:[%s1661_s28 + $0x98] sm:$0xff] }
  0x21   : > { %730 = vperm.xlu0 %1559, %v720_v52   ;;  %v548_v33 = vsel %vm483_vm0, %v440_v26, 0  ;;  %v447_v34 = vpack.c.bf16 %v410_v30, %v409_v29  ;;  %v362_v36 = vld [vmem:[%s1661_s28 + $0x28] sm:$0xff]  ;;  %v393_v37 = vld [vmem:[%s1661_s28 + $0x120] sm:$0xff]  ;;  %v407_v43 = vld [vmem:[%s1661_s28 + $0x190] sm:$0xff]  ;;  %v430_v46 = vpack.c.bf16 %v376_v42, %v375_v41 }
  0x22   : > { %735 = vperm.xlu1 %1560, %v721_v54   ;;  %v394_v38 = vld [vmem:[%s1661_s28 + $0x128] sm:$0xff]  ;;  %v423_v39 = vpack.c.bf16 %v362_v36, %v361_v35  ;;  %v408_v44 = vld [vmem:[%s1661_s28 + $0x198] sm:$0xff]  ;;  %v359_v49 = vld [vmem:[%s1661_s28 + $0x10] sm:$0xff] }
  0x23   : > { %v439_v40 = vpack.c.bf16 %v394_v38, %v393_v37  ;;  %v446_v48 = vpack.c.bf16 %v408_v44, %v407_v43  ;;  %v360_v50 = vld [vmem:[%s1661_s28 + $0x18] sm:$0xff]  ;;  %v391_v51 = vld [vmem:[%s1661_s28 + $0x110] sm:$0xff]  ;;  %v373_v55 = vld [vmem:[%s1661_s28 + $0x80] sm:$0xff] }
  0x24   : > { %v497_v45 = vsel %vm483_vm0, %v423_v39, 0  ;;  %v392_v52 = vld [vmem:[%s1661_s28 + $0x118] sm:$0xff]  ;;  %v422_v53 = vpack.c.bf16 %v360_v50, %v359_v49  ;;  %v374_v56 = vld [vmem:[%s1661_s28 + $0x88] sm:$0xff]  ;;  %v405_v57 = vld [vmem:[%s1661_s28 + $0x180] sm:$0xff] }
  0x25   : > { %981 = vperm.xlu0 %1559, %v967_v60   ;;  %1498 = vmatpush3.bf16.xpose.msra.mxu0 %v506_v61  ;;  %v545_v47 = vsel %vm483_vm0, %v439_v40, 0  ;;  %v438_v54 = vpack.c.bf16 %v392_v52, %v391_v51  ;;  %v406_v58 = vld [vmem:[%s1661_s28 + $0x188] sm:$0xff]  ;;  %v429_v60 = vpack.c.bf16 %v374_v56, %v373_v55  ;;  %v455_v9 = vld [vmem:[%s2076_s1 + $0x10] sm:$0xff] }
  0x26   : > { %986 = vperm.xlu1 %1560, %v968_v63   ;;  %1518 = vmatpush3.bf16.xpose.msra.mxu1 %v554_v0  ;;  %v494_v59 = vsel %vm483_vm0, %v422_v53, 0  ;;  %v357_v63 = vld [vmem:[%s1661_s28] sm:$0xff]  ;;  %v358_v0 = vld [vmem:[%s1661_s28 + $0x8] sm:$0xff] }
  0x27   : > { %1536 = vmatprep.subr.msk.bf16.mxu0 %vm483_vm0, %v433_v62  ;;  %1544 = vmatprep.subr.msk.bf16.mxu1 %vm483_vm0, %v449_v1  ;;  %v542_v61 = vsel %vm483_vm0, %v438_v54, 0  ;;  %v445_v62 = vpack.c.bf16 %v406_v58, %v405_v57  ;;  %v389_v1 = vld [vmem:[%s1661_s28 + $0x100] sm:$0xff]  ;;  %v390_v4 = vld [vmem:[%s1661_s28 + $0x108] sm:$0xff]  ;;  %v421_v5 = vpack.c.bf16 %v358_v0, %v357_v63 }
  0x28   : > { %v437_v6 = vpack.c.bf16 %v390_v4, %v389_v1  ;;  %v710_v4 = vld [vmem:[%s2078_s3 + $0x10] sm:$0xff] }
  0x29   : > { %971 = vperm.xlu0 %1559, %v965_v8   ;;  %v491_v7 = vsel %vm483_vm0, %v421_v5, 0  ;;  %v711_v5 = vld [vmem:[%s2078_s3 + $0x18] sm:$0xff] }
  0x2a   : > { %976 = vperm.xlu1 %1560, %v966_v10   ;;  %v539_v8 = vsel %vm483_vm0, %v437_v6, 0  ;;  %v456_v10 = vld [vmem:[%s2076_s1 + $0x18] sm:$0xff]  ;;  %v717_v6 = vpack.c.bf16 %v711_v5, %v710_v4 }
  0x2b   : > { %v458_v11 = vpack.c.bf16 %v456_v10, %v455_v9  ;;  %v714_v10 = vld [vmem:[%s2078_s3 + $0x30] sm:$0xff] }
  0x2d   : > { %1123 = vperm.xlu0 %1559, %v1120_v16   ;;  %1500 = vmatpush3.bf16.xpose.msra.mxu0 %v503_v17 }
  0x2e   : > { %1520 = vmatpush3.bf16.xpose.msra.mxu1 %v551_v19  ;;  %1537 = vmatprep.subr.msk.bf16.mxu0 %vm483_vm0, %v432_v18 }
  0x2f   : > { %1545 = vmatprep.subr.msk.bf16.mxu1 %vm483_vm0, %v448_v20 }
  0x35   : > { %1502 = vmatpush3.bf16.xpose.msra.mxu0 %v500_v31 }
  0x36   : > { %1522 = vmatpush3.bf16.xpose.msra.mxu1 %v548_v33  ;;  %1538 = vmatprep.subr.msk.bf16.mxu0 %vm483_vm0, %v431_v32 }
  0x37   : > { %1546 = vmatprep.subr.msk.bf16.mxu1 %vm483_vm0, %v447_v34 }
  0x3d   : > { %1504 = vmatpush3.bf16.xpose.msra.mxu0 %v497_v45 }
  0x3e   : > { %1524 = vmatpush3.bf16.xpose.msra.mxu1 %v545_v47  ;;  %1539 = vmatprep.subr.msk.bf16.mxu0 %vm483_vm0, %v430_v46 }
  0x3f   : > { %1547 = vmatprep.subr.msk.bf16.mxu1 %vm483_vm0, %v446_v48 }
  0x45   : > { %1506 = vmatpush3.bf16.xpose.msra.mxu0 %v494_v59 }
  0x46   : > { %1526 = vmatpush3.bf16.xpose.msra.mxu1 %v542_v61  ;;  %1540 = vmatprep.subr.msk.bf16.mxu0 %vm483_vm0, %v429_v60  ;;  %v708_v61 = vld [vmem:[%s2078_s3] sm:$0xff] }
  0x47   : > { %1548 = vmatprep.subr.msk.bf16.mxu1 %vm483_vm0, %v445_v62  ;;  %v709_v62 = vld [vmem:[%s2078_s3 + $0x8] sm:$0xff] }
  0x48   : > { %v716_v1 = vpack.c.bf16 %v709_v62, %v708_v61 }
  0x4d   : > { %1508 = vmatpush3.bf16.xpose.msra.mxu0 %v491_v7  ;;  %v712_v7 = vld [vmem:[%s2078_s3 + $0x20] sm:$0xff] }
  0x4e   : > { %1528 = vmatpush3.bf16.xpose.msra.mxu1 %v539_v8  ;;  %v713_v8 = vld [vmem:[%s2078_s3 + $0x28] sm:$0xff] }
  0x4f   : > { %v718_v9 = vpack.c.bf16 %v713_v8, %v712_v7 }
  0x54   : > { %1510 = vmatmul.mubr.msk.bf16.vlgmr.msra.gmra.mxu0 %vm483_vm0, %v1637_v2 }
  0x55   : > { %1530 = vmatmul.mubr.msk.bf16.vlgmr.msra.gmra.mxu1 %vm483_vm0, %v1637_v2  ;;  %1511 = vmatprep.mubr.msk.bf16.mxu0 %vm483_vm0, %v458_v11 }
  0x56   : > { %1531 = vmatprep.mubr.msk.bf16.mxu1 %vm483_vm0, %v458_v11 }
  0x5c   : > { %1512 = vmatmul.mubr.msk.bf16.gmra.mxu0 %vm483_vm0, %v458_v11 }
  0x5d   : > { %1532 = vmatmul.mubr.msk.bf16.gmra.mxu1 %vm483_vm0, %v458_v11  ;;  %813 = vmatprep.mubr.bf16.mxu0 %v1569_v3  ;;  %v715_v11 = vld [vmem:[%s2078_s3 + $0x38] sm:$0xff] }
  0x5e   : > { %886 = vmatprep.mubr.bf16.mxu1 %v1569_v3 }
  0x88   : > { %v476_v17 = vpop.permute.xlu0 %475  ;;  %v466_v2 = vpop.permute.xlu1 %465 }
  0x8c   : > { %v481_v24 = vpop.permute.xlu0 %480  ;;  %v471_v26 = vpop.permute.xlu1 %470 }
 0x114   : > { %v620_v12 = vpop.f32.mrf.mxu0 }
 0x115   : > { %v673_v13 = vpop.f32.mrf.mxu1  ;;  %v621_v50 = vadd.f32 %v620_v12, %v466_v2  ;;  %v719_v12 = vpack.c.bf16 %v715_v11, %v714_v10 }
 0x116   : > { %v622_v14 = vpop.f32.mrf.mxu0  ;;  %v674_v28 = vadd.f32 %v673_v13, %v466_v2 }
 0x117   : > { %v675_v15 = vpop.f32.mrf.mxu1  ;;  %v623_v37 = vadd.f32 %v622_v14, %v466_v2 }
 0x118   : > { %v624_v16 = vpop.f32.mrf.mxu0  ;;  %v676_v32 = vadd.f32 %v675_v15, %v466_v2 }
 0x119   : > { %v677_v18 = vpop.f32.mrf.mxu1  ;;  %v625_v42 = vadd.f32 %v624_v16, %v471_v26 }
 0x11a   : > { %v626_v19 = vpop.f32.mrf.mxu0  ;;  %v678_v46 = vadd.f32 %v677_v18, %v471_v26 }
 0x11b   : > { %v679_v20 = vpop.f32.mrf.mxu1  ;;  %v627_v29 = vadd.f32 %v626_v19, %v471_v26  ;;  %v692_v54 = vpack.c.bf16 %v625_v42, %v621_v50 }
 0x11c   : > { %v630_v21 = vpop.f32.mrf.mxu0  ;;  %v680_v33 = vadd.f32 %v679_v20, %v471_v26  ;;  %v694_v57 = vpack.c.bf16 %v678_v46, %v674_v28 }
 0x11d   : > { %v683_v22 = vpop.f32.mrf.mxu1  ;;  %v631_v34 = vadd.f32 %v630_v21, %v476_v17  ;;  %v693_v47 = vpack.c.bf16 %v627_v29, %v623_v37  ;;  %v700_v63 = vmax.bf16 %v1569_v3, %v692_v54  ;;  %v766_v21 = vpop.permute.xlu1 %765 }
 0x11e   : > { %v632_v23 = vpop.f32.mrf.mxu0  ;;  %v684_v38 = vadd.f32 %v683_v22, %v476_v17  ;;  %v695_v51 = vpack.c.bf16 %v680_v33, %v676_v32  ;;  %v702_v0 = vmax.bf16 %v1569_v3, %v694_v57 }
 0x11f   : > { %v685_v25 = vpop.f32.mrf.mxu1  ;;  %v633_v39 = vadd.f32 %v632_v23, %v476_v17  ;;  %v701_v59 = vmax.bf16 %v1569_v3, %v693_v47 }
 0x120   : > { %v634_v27 = vpop.f32.mrf.mxu0  ;;  %v686_v43 = vadd.f32 %v685_v25, %v476_v17  ;;  %v703_v60 = vmax.bf16 %v1569_v3, %v695_v51 }
 0x121   : > { %v635_v30 = vadd.f32 %v634_v27, %v481_v24  ;;  %v687_v31 = vpop.f32.mrf.mxu1  ;;  %v756_v28 = vpop.permute.xlu1 %755 }
 0x122   : > { %v688_v35 = vadd.f32 %v687_v31, %v481_v24  ;;  %v636_v36 = vpop.f32.mrf.mxu0 }
 0x123   : > { %v637_v40 = vadd.f32 %v636_v36, %v481_v24  ;;  %v689_v41 = vpop.f32.mrf.mxu1  ;;  %v696_v44 = vpack.c.bf16 %v635_v30, %v631_v34  ;;  %v761_v30 = vpop.permute.xlu0 %760 }
 0x124   : > { %v690_v45 = vadd.f32 %v689_v41, %v481_v24  ;;  %v698_v48 = vpack.c.bf16 %v688_v35, %v684_v38 }
 0x125   : > { %v697_v49 = vpack.c.bf16 %v637_v40, %v633_v39  ;;  %v704_v55 = vmax.bf16 %v1569_v3, %v696_v44  ;;  %v746_v36 = vpop.permute.xlu1 %745 }
 0x126   : > { %v699_v52 = vpack.c.bf16 %v690_v45, %v686_v43  ;;  %v706_v58 = vmax.bf16 %v1569_v3, %v698_v48 }
 0x127   : > { %v705_v53 = vmax.bf16 %v1569_v3, %v697_v49  ;;  %v751_v38 = vpop.permute.xlu0 %750 }
 0x128   : > { %v707_v56 = vmax.bf16 %v1569_v3, %v699_v52 }
 0x129   : > { %793 = vmatprep.subr.bf16.mxu0 %v705_v53  ;;  %v736_v44 = vpop.permute.xlu1 %735 }
 0x12a   : > { %866 = vmatprep.subr.bf16.mxu1 %v707_v56  ;;  %794 = vmatpush1.bf16.msra.mxu0 %v704_v55 }
 0x12b   : > { %867 = vmatpush1.bf16.msra.mxu1 %v706_v58  ;;  %795 = vmatprep.subr.bf16.mxu0 %v701_v59  ;;  %v741_v46 = vpop.permute.xlu0 %740 }
 0x12c   : > { %868 = vmatprep.subr.bf16.mxu1 %v703_v60 }
 0x12e   : > { %796 = vmatpush1.bf16.msra.mxu0 %v700_v63 }
 0x12f   : > { %869 = vmatpush1.bf16.msra.mxu1 %v702_v0 }
 0x131   : > { %1477 = vmatmul.mubr.msk.bf16.vlgmr.msra.gmra.mxu0 %vm768_vm1, %v716_v1 }
 0x132   : > { %1481 = vmatmul.mubr.msk.bf16.vlgmr.msra.gmra.mxu1 %vm768_vm1, %v716_v1  ;;  %823 = vmatprep.mubr.bf16.mxu0 %v1569_v3 }
 0x133   : > { %896 = vmatprep.mubr.bf16.mxu1 %v1569_v3 }
 0x139   : > { %1478 = vmatmul.mubr.msk.bf16.gmra.mxu0 %vm768_vm1, %v717_v6 }
 0x13a   : > { %1482 = vmatmul.mubr.msk.bf16.gmra.mxu1 %vm768_vm1, %v717_v6  ;;  %833 = vmatprep.mubr.bf16.mxu0 %v1569_v3 }
 0x13b   : > { %906 = vmatprep.mubr.bf16.mxu1 %v1569_v3 }
 0x141   : > { %1479 = vmatmul.mubr.msk.bf16.gmra.mxu0 %vm768_vm1, %v718_v9 }
 0x142   : > { %1483 = vmatmul.mubr.msk.bf16.gmra.mxu1 %vm768_vm1, %v718_v9  ;;  %843 = vmatprep.mubr.bf16.mxu0 %v1569_v3 }
 0x143   : > { %916 = vmatprep.mubr.bf16.mxu1 %v1569_v3 }
 0x149   : > { %1480 = vmatmul.mubr.msk.bf16.gmra.mxu0 %vm768_vm1, %v719_v12 }
 0x14a   : > { %1484 = vmatmul.mubr.msk.bf16.gmra.mxu1 %vm768_vm1, %v719_v12  ;;  %1028 = vmatprep.mubr.bf16.mxu0 %v1569_v3 }
 0x14b   : > { %1081 = vmatprep.mubr.bf16.mxu1 %v1569_v3 }
 0x1f1   : > { %v1862_v13 = vpop.f32.mrf.mxu0 }
 0x1f2   : > { %v1864_v14 = vpop.f32.mrf.mxu1 }
 0x1f3   : > { %v1866_v15 = vpop.f32.mrf.mxu0 }
 0x1f4   : > { %v1868_v16 = vpop.f32.mrf.mxu1 }
 0x1f5   : > { %v1870_v17 = vpop.f32.mrf.mxu0 }
 0x1f6   : > { %v1872_v18 = vpop.f32.mrf.mxu1 }
 0x1f7   : > { %v821_v2 = vpop.f32.mrf.mxu0 }
 0x1f8   : > { %v894_v19 = vpop.f32.mrf.mxu1  ;;  %v1878_v47 = vadd.f32 %v821_v2, %v736_v44 }
 0x1f9   : > { %v1874_v20 = vpop.f32.mrf.mxu0  ;;  %v1880_v48 = vadd.f32 %v894_v19, %v736_v44 }
 0x1fa   : > { %v1876_v22 = vpop.f32.mrf.mxu1 }
 0x1fb   : > { %v827_v23 = vpop.f32.mrf.mxu0 }
 0x1fc   : > { %v900_v24 = vpop.f32.mrf.mxu1  ;;  %v828_v50 = vadd.f32 %v827_v23, %v741_v46 }
 0x1fd   : > { %v829_v25 = vpop.f32.mrf.mxu0  ;;  %v901_v23 = vadd.f32 %v900_v24, %v741_v46  ;;  %v826_v24 = vadd.f32 %v1874_v20, %v741_v46 }
 0x1fe   : > { %v902_v26 = vpop.f32.mrf.mxu1 }
 0x1ff   : > { %v831_v27 = vpop.f32.mrf.mxu0 }
 0x200   : > { %v904_v29 = vpop.f32.mrf.mxu1  ;;  %v832_v51 = vadd.f32 %v831_v27, %v746_v36  ;;  %v830_v27 = vadd.f32 %v829_v25, %v746_v36 }
 0x201   : > { %v835_v31 = vpop.f32.mrf.mxu0  ;;  %v905_v11 = vadd.f32 %v904_v29, %v746_v36 }
 0x202   : > { %v908_v32 = vpop.f32.mrf.mxu1  ;;  %v836_v12 = vadd.f32 %v835_v31, %v751_v38  ;;  %v731_v31 = vpop.permute.xlu0 %730 }
 0x203   : > { %v837_v33 = vpop.f32.mrf.mxu0  ;;  %v934_v25 = vpack.c.bf16 %v905_v11, %v901_v23 }
 0x204   : > { %v910_v34 = vpop.f32.mrf.mxu1  ;;  %v838_v55 = vadd.f32 %v837_v33, %v751_v38  ;;  %v909_v33 = vadd.f32 %v908_v32, %v751_v38  ;;  %v818_v32 = vadd.f32 %v1866_v15, %v731_v31 }
 0x205   : > { %v839_v35 = vpop.f32.mrf.mxu0  ;;  %v911_v60 = vadd.f32 %v910_v34, %v751_v38  ;;  %v899_v38 = vadd.f32 %v1876_v22, %v741_v46 }
 0x206   : > { %v912_v37 = vpop.f32.mrf.mxu1  ;;  %v840_v1 = vadd.f32 %v839_v35, %v756_v28 }
 0x207   : > { %v841_v39 = vpop.f32.mrf.mxu0  ;;  %v913_v7 = vadd.f32 %v912_v37, %v756_v28 }
 0x208   : > { %v914_v40 = vpop.f32.mrf.mxu1  ;;  %v842_v52 = vadd.f32 %v841_v39, %v756_v28  ;;  %v903_v39 = vadd.f32 %v902_v26, %v746_v36  ;;  %v891_v36 = vadd.f32 %v1868_v16, %v731_v31  ;;  %v816_v16 = vadd.f32 %v1862_v13, %v731_v31 }
 0x209   : > { %v845_v41 = vpop.f32.mrf.mxu0  ;;  %v915_v56 = vadd.f32 %v914_v40, %v756_v28  ;;  %v935_v40 = vpack.c.bf16 %v840_v1, %v836_v12  ;;  %v937_v28 = vpack.c.bf16 %v913_v7, %v909_v33  ;;  %v987_v1 = vpop.permute.xlu1 %986 }
 0x20a   : > { %v918_v42 = vpop.f32.mrf.mxu1  ;;  %v846_v57 = vadd.f32 %v845_v41, %v761_v30  ;;  %v936_v8 = vpack.c.bf16 %v842_v52, %v838_v55  ;;  %v820_v41 = vadd.f32 %v1870_v17, %v736_v44  ;;  %v930_v22 = vpack.c.bf16 %v1880_v48, %v891_v36  ;;  %v959_v48 = vld [vmem:[%s2080_s5] sm:$0xff] }
 0x20b   : > { %v847_v43 = vpop.f32.mrf.mxu0  ;;  %v919_v61 = vadd.f32 %v918_v42, %v761_v30  ;;  %v938_v2 = vpack.c.bf16 %v915_v56, %v911_v60  ;;  %v893_v42 = vadd.f32 %v1872_v18, %v736_v44  ;;  %v951_v20 = vmax.bf16 %v1569_v3, %v935_v40  ;;  %v961_v56 = vld [vmem:[%s2080_s5 + $0x10] sm:$0xff] }
 0x20c   : > { %v920_v45 = vpop.f32.mrf.mxu1  ;;  %v848_v62 = vadd.f32 %v847_v43, %v761_v30  ;;  %v952_v29 = vmax.bf16 %v1569_v3, %v936_v8  ;;  %v931_v43 = vpack.c.bf16 %v830_v27, %v826_v24  ;;  %v950_v17 = vmax.bf16 %v1569_v3, %v934_v25 }
 0x20d   : > { %v849_v49 = vpop.f32.mrf.mxu0  ;;  %v921_v4 = vadd.f32 %v920_v45, %v761_v30  ;;  %v954_v26 = vmax.bf16 %v1569_v3, %v938_v2  ;;  %v928_v45 = vpack.c.bf16 %v1878_v47, %v818_v32  ;;  %v889_v18 = vadd.f32 %v1864_v14, %v731_v31  ;;  %v960_v14 = vld [vmem:[%s2080_s5 + $0x8] sm:$0xff]  ;;  %v977_v11 = vpop.permute.xlu1 %976 }
 0x20e   : > { %v850_v53 = vadd.f32 %v849_v49, %v766_v21  ;;  %v922_v54 = vpop.f32.mrf.mxu1  ;;  %v933_v49 = vpack.c.bf16 %v903_v39, %v899_v38  ;;  %v927_v44 = vpack.c.bf16 %v820_v41, %v816_v16  ;;  %v947_v46 = vmax.bf16 %v1569_v3, %v931_v43 }
 0x20f   : > { %v923_v58 = vadd.f32 %v922_v54, %v766_v21  ;;  %v851_v59 = vpop.f32.mrf.mxu0  ;;  %v929_v47 = vpack.c.bf16 %v893_v42, %v889_v18  ;;  %v944_v52 = vmax.bf16 %v1569_v3, %v928_v45  ;;  %v946_v13 = vmax.bf16 %v1569_v3, %v930_v22 }
 0x210   : > { %v852_v63 = vadd.f32 %v851_v59, %v766_v21  ;;  %v924_v0 = vpop.f32.mrf.mxu1  ;;  %v939_v5 = vpack.c.bf16 %v850_v53, %v846_v57  ;;  %v943_v53 = vmax.bf16 %v1569_v3, %v927_v44  ;;  %v963_v55 = vpack.c.bf16 %v960_v14, %v959_v48  ;;  %v962_v57 = vld [vmem:[%s2080_s5 + $0x18] sm:$0xff] }
 0x211   : > { %v925_v6 = vadd.f32 %v924_v0, %v766_v21  ;;  %v941_v9 = vpack.c.bf16 %v923_v58, %v919_v61  ;;  %v932_v21 = vpack.c.bf16 %v832_v51, %v828_v50  ;;  %v953_v50 = vmax.bf16 %v1569_v3, %v937_v28 }
 0x212   : > { %v940_v10 = vpack.c.bf16 %v852_v63, %v848_v62  ;;  %v955_v35 = vmax.bf16 %v1569_v3, %v939_v5  ;;  %v949_v51 = vmax.bf16 %v1569_v3, %v933_v49  ;;  %v945_v54 = vmax.bf16 %v1569_v3, %v929_v47  ;;  %v982_v5 = vpop.permute.xlu0 %981 }
 0x213   : > { %v942_v19 = vpack.c.bf16 %v925_v6, %v921_v4  ;;  %v957_v37 = vmax.bf16 %v1569_v3, %v941_v9  ;;  %v948_v15 = vmax.bf16 %v1569_v3, %v932_v21  ;;  %v964_v58 = vpack.c.bf16 %v962_v57, %v961_v56 }
 0x214   : > { %v956_v34 = vmax.bf16 %v1569_v3, %v940_v10 }
 0x215   : > { %v958_v30 = vmax.bf16 %v1569_v3, %v942_v19 }
 0x216   : > { %1004 = vmatprep.subr.bf16.mxu0 %v956_v34  ;;  %v972_v2 = vpop.permute.xlu0 %971 }
 0x217   : > { %1057 = vmatprep.subr.bf16.mxu1 %v958_v30  ;;  %1005 = vmatpush1.bf16.msra.mxu0 %v955_v35 }
 0x218   : > { %1058 = vmatpush1.bf16.msra.mxu1 %v957_v37  ;;  %1006 = vmatprep.subr.bf16.mxu0 %v952_v29 }
 0x219   : > { %1059 = vmatprep.subr.bf16.mxu1 %v954_v26 }
 0x21b   : > { %1007 = vmatpush1.bf16.msra.mxu0 %v951_v20 }
 0x21c   : > { %1060 = vmatpush1.bf16.msra.mxu1 %v953_v50  ;;  %1008 = vmatprep.subr.bf16.mxu0 %v948_v15 }
 0x21d   : > { %1061 = vmatprep.subr.bf16.mxu1 %v950_v17 }
 0x21f   : > { %1009 = vmatpush1.bf16.msra.mxu0 %v947_v46  ;;  %v1118_v46 = vld [vmem:[%s2082_s7] sm:$0xff] }
 0x220   : > { %1062 = vmatpush1.bf16.msra.mxu1 %v949_v51  ;;  %1010 = vmatprep.subr.bf16.mxu0 %v944_v52  ;;  %v1119_v52 = vpack.c.bf16 %v1118_v46, %v1118_v46 }
 0x221   : > { %1063 = vmatprep.subr.bf16.mxu1 %v946_v13  ;;  %v1124_v13 = vpop.permute.xlu0 %1123 }
 0x223   : > { %1011 = vmatpush1.bf16.msra.mxu0 %v943_v53 }
 0x224   : > { %1064 = vmatpush1.bf16.msra.mxu1 %v945_v54 }
 0x226   : > { %1485 = vmatmul.mubr.msk.bf16.vlgmr.msra.gmra.mxu0 %vm989_vm2, %v963_v55 }
 0x227   : > { %1487 = vmatmul.mubr.msk.bf16.vlgmr.msra.gmra.mxu1 %vm989_vm2, %v963_v55  ;;  %1038 = vmatprep.mubr.bf16.mxu0 %v1569_v3 }
 0x228   : > { %1091 = vmatprep.mubr.bf16.mxu1 %v1569_v3 }
 0x22e   : > { %1486 = vmatmul.mubr.msk.bf16.gmra.mxu0 %vm989_vm2, %v964_v58 }
 0x22f   : > { %1488 = vmatmul.mubr.msk.bf16.gmra.mxu1 %vm989_vm2, %v964_v58  ;;  %1161 = vmatprep.mubr.bf16.mxu0 %v1569_v3 }
 0x230   : > { %1202 = vmatprep.mubr.bf16.mxu1 %v1569_v3 }
 0x2e6   : > { %v1030_v59 = vpop.f32.mrf.mxu0 }
 0x2e7   : > { %v1083_v60 = vpop.f32.mrf.mxu1  ;;  %v1031_v42 = vadd.f32 %v1030_v59, %v972_v2 }
 0x2e8   : > { %v1032_v61 = vpop.f32.mrf.mxu0  ;;  %v1084_v45 = vadd.f32 %v1083_v60, %v972_v2 }
 0x2e9   : > { %v1085_v62 = vpop.f32.mrf.mxu1  ;;  %v1033_v33 = vadd.f32 %v1032_v61, %v972_v2 }
 0x2ea   : > { %v1034_v63 = vpop.f32.mrf.mxu0  ;;  %v1086_v30 = vadd.f32 %v1085_v62, %v972_v2 }
 0x2eb   : > { %v1087_v0 = vpop.f32.mrf.mxu1  ;;  %v1035_v31 = vadd.f32 %v1034_v63, %v977_v11 }
 0x2ec   : > { %v1036_v4 = vpop.f32.mrf.mxu0  ;;  %v1088_v32 = vadd.f32 %v1087_v0, %v977_v11 }
 0x2ed   : > { %v1089_v6 = vpop.f32.mrf.mxu1  ;;  %v1037_v19 = vadd.f32 %v1036_v4, %v977_v11  ;;  %v1102_v50 = vpack.c.bf16 %v1035_v31, %v1031_v42 }
 0x2ee   : > { %v1040_v7 = vpop.f32.mrf.mxu0  ;;  %v1090_v34 = vadd.f32 %v1089_v6, %v977_v11  ;;  %v1104_v22 = vpack.c.bf16 %v1088_v32, %v1084_v45 }
 0x2ef   : > { %v1093_v8 = vpop.f32.mrf.mxu1  ;;  %v1041_v39 = vadd.f32 %v1040_v7, %v982_v5  ;;  %v1103_v36 = vpack.c.bf16 %v1037_v19, %v1033_v33  ;;  %v1110_v47 = vmax.bf16 %v1569_v3, %v1102_v50 }
 0x2f0   : > { %v1042_v9 = vpop.f32.mrf.mxu0  ;;  %v1094_v21 = vadd.f32 %v1093_v8, %v982_v5  ;;  %v1105_v43 = vpack.c.bf16 %v1090_v34, %v1086_v30  ;;  %v1112_v51 = vmax.bf16 %v1569_v3, %v1104_v22 }
 0x2f1   : > { %v1095_v10 = vpop.f32.mrf.mxu1  ;;  %v1043_v28 = vadd.f32 %v1042_v9, %v982_v5  ;;  %v1111_v18 = vmax.bf16 %v1569_v3, %v1103_v36 }
 0x2f2   : > { %v1044_v12 = vpop.f32.mrf.mxu0  ;;  %v1096_v24 = vadd.f32 %v1095_v10, %v982_v5  ;;  %v1113_v44 = vmax.bf16 %v1569_v3, %v1105_v43 }
 0x2f3   : > { %v1045_v23 = vadd.f32 %v1044_v12, %v987_v1  ;;  %v1097_v27 = vpop.f32.mrf.mxu1 }
 0x2f4   : > { %v1098_v40 = vadd.f32 %v1097_v27, %v987_v1  ;;  %v1046_v35 = vpop.f32.mrf.mxu0 }
 0x2f5   : > { %v1047_v37 = vadd.f32 %v1046_v35, %v987_v1  ;;  %v1099_v29 = vpop.f32.mrf.mxu1  ;;  %v1106_v25 = vpack.c.bf16 %v1045_v23, %v1041_v39 }
 0x2f6   : > { %v1100_v26 = vadd.f32 %v1099_v29, %v987_v1  ;;  %v1108_v38 = vpack.c.bf16 %v1098_v40, %v1094_v21 }
 0x2f7   : > { %v1107_v41 = vpack.c.bf16 %v1047_v37, %v1043_v28  ;;  %v1114_v15 = vmax.bf16 %v1569_v3, %v1106_v25 }
 0x2f8   : > { %v1109_v20 = vpack.c.bf16 %v1100_v26, %v1096_v24  ;;  %v1116_v17 = vmax.bf16 %v1569_v3, %v1108_v38 }
 0x2f9   : > { %v1115_v49 = vmax.bf16 %v1569_v3, %v1107_v41 }
 0x2fa   : > { %v1117_v16 = vmax.bf16 %v1569_v3, %v1109_v20 }
 0x2fb   : > { %1141 = vmatprep.subr.bf16.mxu0 %v1115_v49 }
 0x2fc   : > { %1182 = vmatprep.subr.bf16.mxu1 %v1117_v16  ;;  %1142 = vmatpush1.bf16.msra.mxu0 %v1114_v15 }
 0x2fd   : > { %1183 = vmatpush1.bf16.msra.mxu1 %v1116_v17  ;;  %1143 = vmatprep.subr.bf16.mxu0 %v1111_v18 }
 0x2fe   : > { %1184 = vmatprep.subr.bf16.mxu1 %v1113_v44 }
 0x300   : > { %1144 = vmatpush1.bf16.msra.mxu0 %v1110_v47 }
 0x301   : > { %1185 = vmatpush1.bf16.msra.mxu1 %v1112_v51 }
 0x303   : > { %1489 = vmatmul.mubr.msk.bf16.vlgmr.msra.gmra.mxu0 %vm768_vm1, %v1119_v52 }
 0x304   : > { %1490 = vmatmul.mubr.msk.bf16.vlgmr.msra.gmra.mxu1 %vm768_vm1, %v1119_v52 }
 0x3c3   : > { %v1163_v48 = vpop.f32.mrf.mxu0 }
 0x3c4   : > { %v1164_v14 = vadd.f32 %v1163_v48, %v1124_v13  ;;  %v1204_v53 = vpop.f32.mrf.mxu1 }
 0x3c5   : > { %v1165_v54 = vpop.f32.mrf.mxu0  ;;  %v1205_v63 = vadd.f32 %v1204_v53, %v1124_v13 }
 0x3c6   : > { %v1211_v55 = vmax.f32 %v1164_v14, 0.0  ;;  %v1166_v56 = vadd.f32 %v1165_v54, %v1124_v13  ;;  %v1206_v57 = vpop.f32.mrf.mxu1 }
 0x3c7   : > { %v1167_v58 = vpop.f32.mrf.mxu0  ;;  %v1207_v62 = vadd.f32 %v1206_v57, %v1124_v13  ;;  %v1213_v1 = vmax.f32 %v1205_v63, 0.0 }
 0x3c8   : > { %v1212_v59 = vmax.f32 %v1166_v56, 0.0  ;;  %1215 = vxpose.xlu1.b32.start.end [1/1] (short) %v1211_v55, 128  ;;  %v1208_v3 = vpop.f32.mrf.mxu1 }
 0x3c9   : > { %v1168_v60 = vpop.f32.mrf.mxu0  ;;  %v1214_v0 = vmax.f32 %v1207_v62, 0.0 }
 0x3ca   : > { %1247 = vxpose.xlu0.b32.start.end [1/1] (short) %v1212_v59, 128  ;;  %v1209_v61 = vpop.f32.mrf.mxu1 }
 0x405   : > { %1311 = vxpose.xlu1.b32.start.end [1/1] (short) %v1214_v0, 128 }
 0x407   : > { %1279 = vxpose.xlu0.b32.start.end [1/1] (short) %v1213_v1, 128 }
 0x444   : > { %v1231_v4 = vpop.trf.xlu1 }
 0x445   : > { %1344 = vst.msk [vmem:[%s1942_s13] sm:$0xff] %vm1343_vm3, %v1231_v4 }
 0x446   : > { %v1263_v5 = vpop.trf.xlu0 }
 0x447   : > { %1360 = vst.msk [vmem:[%s1942_s13 + $0x80] sm:$0xff] %vm1343_vm3, %v1263_v5 }
 0x448   : > { %v1232_v6 = vpop.trf.xlu1 }
 0x449   : > { %1345 = vst.msk [vmem:[%s1942_s13 + $0x8] sm:$0xff] %vm1343_vm3, %v1232_v6 }
 0x44a   : > { %v1264_v7 = vpop.trf.xlu0 }
 0x44b   : > { %1361 = vst.msk [vmem:[%s1942_s13 + $0x88] sm:$0xff] %vm1343_vm3, %v1264_v7 }
 0x44c   : > { %v1233_v8 = vpop.trf.xlu1 }
 0x44d   : > { %1346 = vst.msk [vmem:[%s1942_s13 + $0x10] sm:$0xff] %vm1343_vm3, %v1233_v8 }
 0x44e   : > { %v1265_v9 = vpop.trf.xlu0 }
 0x44f   : > { %1362 = vst.msk [vmem:[%s1942_s13 + $0x90] sm:$0xff] %vm1343_vm3, %v1265_v9 }
 0x450   : > { %v1234_v10 = vpop.trf.xlu1 }
 0x451   : > { %1347 = vst.msk [vmem:[%s1942_s13 + $0x18] sm:$0xff] %vm1343_vm3, %v1234_v10 }
 0x452   : > { %v1266_v11 = vpop.trf.xlu0 }
 0x453   : > { %1363 = vst.msk [vmem:[%s1942_s13 + $0x98] sm:$0xff] %vm1343_vm3, %v1266_v11 }
 0x454   : > { %v1235_v12 = vpop.trf.xlu1 }
 0x455   : > { %1348 = vst.msk [vmem:[%s1942_s13 + $0x20] sm:$0xff] %vm1343_vm3, %v1235_v12 }
 0x456   : > { %v1267_v2 = vpop.trf.xlu0 }
 0x457   : > { %1364 = vst.msk [vmem:[%s1942_s13 + $0xa0] sm:$0xff] %vm1343_vm3, %v1267_v2 }
 0x458   : > { %v1236_v19 = vpop.trf.xlu1 }
 0x459   : > { %1349 = vst.msk [vmem:[%s1942_s13 + $0x28] sm:$0xff] %vm1343_vm3, %v1236_v19 }
 0x45a   : > { %v1268_v23 = vpop.trf.xlu0 }
 0x45b   : > { %1365 = vst.msk [vmem:[%s1942_s13 + $0xa8] sm:$0xff] %vm1343_vm3, %v1268_v23 }
 0x45c   : > { %v1237_v27 = vpop.trf.xlu1 }
 0x45d   : > { %1350 = vst.msk [vmem:[%s1942_s13 + $0x30] sm:$0xff] %vm1343_vm3, %v1237_v27 }
 0x45e   : > { %v1269_v33 = vpop.trf.xlu0 }
 0x45f   : > { %1366 = vst.msk [vmem:[%s1942_s13 + $0xb0] sm:$0xff] %vm1343_vm3, %v1269_v33 }
 0x460   : > { %v1238_v34 = vpop.trf.xlu1 }
 0x461   : > { %1351 = vst.msk [vmem:[%s1942_s13 + $0x38] sm:$0xff] %vm1343_vm3, %v1238_v34 }
 0x462   : > { %v1270_v39 = vpop.trf.xlu0 }
 0x463   : > { %1367 = vst.msk [vmem:[%s1942_s13 + $0xb8] sm:$0xff] %vm1343_vm3, %v1270_v39 }
 0x464   : > { %v1239_v40 = vpop.trf.xlu1 }
 0x465   : > { %1352 = vst.msk [vmem:[%s1942_s13 + $0x40] sm:$0xff] %vm1343_vm3, %v1239_v40 }
 0x466   : > { %v1271_v35 = vpop.trf.xlu0 }
 0x467   : > { %1368 = vst.msk [vmem:[%s1942_s13 + $0xc0] sm:$0xff] %vm1343_vm3, %v1271_v35 }
 0x468   : > { %v1240_v30 = vpop.trf.xlu1 }
 0x469   : > { %1353 = vst.msk [vmem:[%s1942_s13 + $0x48] sm:$0xff] %vm1343_vm3, %v1240_v30 }
 0x46a   : > { %v1272_v21 = vpop.trf.xlu0 }
 0x46b   : > { %1369 = vst.msk [vmem:[%s1942_s13 + $0xc8] sm:$0xff] %vm1343_vm3, %v1272_v21 }
 0x46c   : > { %v1241_v28 = vpop.trf.xlu1 }
 0x46d   : > { %1354 = vst.msk [vmem:[%s1942_s13 + $0x50] sm:$0xff] %vm1343_vm3, %v1241_v28 }
 0x46e   : > { %v1273_v37 = vpop.trf.xlu0 }
 0x46f   : > { %1370 = vst.msk [vmem:[%s1942_s13 + $0xd0] sm:$0xff] %vm1343_vm3, %v1273_v37 }
 0x470   : > { %v1242_v29 = vpop.trf.xlu1 }
 0x471   : > { %1355 = vst.msk [vmem:[%s1942_s13 + $0x58] sm:$0xff] %vm1343_vm3, %v1242_v29 }
 0x472   : > { %v1274_v31 = vpop.trf.xlu0 }
 0x473   : > { %1371 = vst.msk [vmem:[%s1942_s13 + $0xd8] sm:$0xff] %vm1343_vm3, %v1274_v31 }
 0x474   : > { %v1243_v24 = vpop.trf.xlu1 }
 0x475   : > { %1356 = vst.msk [vmem:[%s1942_s13 + $0x60] sm:$0xff] %vm1343_vm3, %v1243_v24 }
 0x476   : > { %v1275_v25 = vpop.trf.xlu0 }
 0x477   : > { %1372 = vst.msk [vmem:[%s1942_s13 + $0xe0] sm:$0xff] %vm1343_vm3, %v1275_v25 }
 0x478   : > { %v1244_v26 = vpop.trf.xlu1 }
 0x479   : > { %1357 = vst.msk [vmem:[%s1942_s13 + $0x68] sm:$0xff] %vm1343_vm3, %v1244_v26 }
 0x47a   : > { %v1276_v32 = vpop.trf.xlu0 }
 0x47b   : > { %1373 = vst.msk [vmem:[%s1942_s13 + $0xe8] sm:$0xff] %vm1343_vm3, %v1276_v32 }
 0x47c   : > { %v1245_v36 = vpop.trf.xlu1 }
 0x47d   : > { %1358 = vst.msk [vmem:[%s1942_s13 + $0x70] sm:$0xff] %vm1343_vm3, %v1245_v36 }
 0x47e   : > { %v1277_v38 = vpop.trf.xlu0 }
 0x47f   : > { %1374 = vst.msk [vmem:[%s1942_s13 + $0xf0] sm:$0xff] %vm1343_vm3, %v1277_v38 }
 0x480   : > { %v1246_v41 = vpop.trf.xlu1 }
 0x481   : > { %1359 = vst.msk [vmem:[%s1942_s13 + $0x78] sm:$0xff] %vm1343_vm3, %v1246_v41 }
 0x482   : > { %v1278_v42 = vpop.trf.xlu0 }
 0x483   : > { %1375 = vst.msk [vmem:[%s1942_s13 + $0xf8] sm:$0xff] %vm1343_vm3, %v1278_v42 }
 0x484   : > { %v1327_v43 = vpop.trf.xlu1 }
 0x485   : > { %1392 = vst.msk [vmem:[%s1942_s13 + $0x180] sm:$0xff] %vm1343_vm3, %v1327_v43 }
 0x486   : > { %v1295_v20 = vpop.trf.xlu0 }
 0x487   : > { %1376 = vst.msk [vmem:[%s1942_s13 + $0x100] sm:$0xff] %vm1343_vm3, %v1295_v20 }
 0x488   : > { %v1328_v45 = vpop.trf.xlu1 }
 0x489   : > { %1393 = vst.msk [vmem:[%s1942_s13 + $0x188] sm:$0xff] %vm1343_vm3, %v1328_v45 }
 0x48a   : > { %v1296_v49 = vpop.trf.xlu0 }
 0x48b   : > { %1377 = vst.msk [vmem:[%s1942_s13 + $0x108] sm:$0xff] %vm1343_vm3, %v1296_v49 }
 0x48c   : > { %v1329_v50 = vpop.trf.xlu1 }
 0x48d   : > { %1394 = vst.msk [vmem:[%s1942_s13 + $0x190] sm:$0xff] %vm1343_vm3, %v1329_v50 }
 0x48e   : > { %v1297_v15 = vpop.trf.xlu0 }
 0x48f   : > { %1378 = vst.msk [vmem:[%s1942_s13 + $0x110] sm:$0xff] %vm1343_vm3, %v1297_v15 }
 0x490   : > { %v1330_v16 = vpop.trf.xlu1 }
 0x491   : > { %1395 = vst.msk [vmem:[%s1942_s13 + $0x198] sm:$0xff] %vm1343_vm3, %v1330_v16 }
 0x492   : > { %v1298_v22 = vpop.trf.xlu0 }
 0x493   : > { %1379 = vst.msk [vmem:[%s1942_s13 + $0x118] sm:$0xff] %vm1343_vm3, %v1298_v22 }
 0x494   : > { %v1331_v17 = vpop.trf.xlu1 }
 0x495   : > { %1396 = vst.msk [vmem:[%s1942_s13 + $0x1a0] sm:$0xff] %vm1343_vm3, %v1331_v17 }
 0x496   : > { %v1299_v18 = vpop.trf.xlu0 }
 0x497   : > { %1380 = vst.msk [vmem:[%s1942_s13 + $0x120] sm:$0xff] %vm1343_vm3, %v1299_v18 }
 0x498   : > { %v1332_v44 = vpop.trf.xlu1 }
 0x499   : > { %1397 = vst.msk [vmem:[%s1942_s13 + $0x1a8] sm:$0xff] %vm1343_vm3, %v1332_v44 }
 0x49a   : > { %v1300_v46 = vpop.trf.xlu0 }
 0x49b   : > { %1381 = vst.msk [vmem:[%s1942_s13 + $0x128] sm:$0xff] %vm1343_vm3, %v1300_v46 }
 0x49c   : > { %v1333_v47 = vpop.trf.xlu1 }
 0x49d   : > { %1398 = vst.msk [vmem:[%s1942_s13 + $0x1b0] sm:$0xff] %vm1343_vm3, %v1333_v47 }
 0x49e   : > { %v1301_v51 = vpop.trf.xlu0 }
 0x49f   : > { %1382 = vst.msk [vmem:[%s1942_s13 + $0x130] sm:$0xff] %vm1343_vm3, %v1301_v51 }
 0x4a0   : > { %v1334_v52 = vpop.trf.xlu1 }
 0x4a1   : > { %1399 = vst.msk [vmem:[%s1942_s13 + $0x1b8] sm:$0xff] %vm1343_vm3, %v1334_v52 }
 0x4a2   : > { %v1302_v13 = vpop.trf.xlu0 }
 0x4a3   : > { %1383 = vst.msk [vmem:[%s1942_s13 + $0x138] sm:$0xff] %vm1343_vm3, %v1302_v13 }
 0x4a4   : > { %v1335_v48 = vpop.trf.xlu1 }
 0x4a5   : > { %1400 = vst.msk [vmem:[%s1942_s13 + $0x1c0] sm:$0xff] %vm1343_vm3, %v1335_v48 }
 0x4a6   : > { %v1303_v14 = vpop.trf.xlu0 }
 0x4a7   : > { %1384 = vst.msk [vmem:[%s1942_s13 + $0x140] sm:$0xff] %vm1343_vm3, %v1303_v14 }
 0x4a8   : > { %v1336_v53 = vpop.trf.xlu1 }
 0x4a9   : > { %1401 = vst.msk [vmem:[%s1942_s13 + $0x1c8] sm:$0xff] %vm1343_vm3, %v1336_v53 }
 0x4aa   : > { %v1304_v54 = vpop.trf.xlu0 }
 0x4ab   : > { %1385 = vst.msk [vmem:[%s1942_s13 + $0x148] sm:$0xff] %vm1343_vm3, %v1304_v54 }
 0x4ac   : > { %v1337_v55 = vpop.trf.xlu1 }
 0x4ad   : > { %1402 = vst.msk [vmem:[%s1942_s13 + $0x1d0] sm:$0xff] %vm1343_vm3, %v1337_v55 }
 0x4ae   : > { %v1305_v56 = vpop.trf.xlu0 }
 0x4af   : > { %1386 = vst.msk [vmem:[%s1942_s13 + $0x150] sm:$0xff] %vm1343_vm3, %v1305_v56 }
 0x4b0   : > { %v1338_v57 = vpop.trf.xlu1 }
 0x4b1   : > { %1403 = vst.msk [vmem:[%s1942_s13 + $0x1d8] sm:$0xff] %vm1343_vm3, %v1338_v57 }
 0x4b2   : > { %v1306_v58 = vpop.trf.xlu0 }
 0x4b3   : > { %1387 = vst.msk [vmem:[%s1942_s13 + $0x158] sm:$0xff] %vm1343_vm3, %v1306_v58 }
 0x4b4   : > { %v1339_v59 = vpop.trf.xlu1 }
 0x4b5   : > { %1404 = vst.msk [vmem:[%s1942_s13 + $0x1e0] sm:$0xff] %vm1343_vm3, %v1339_v59 }
 0x4b6   : > { %v1307_v3 = vpop.trf.xlu0 }
 0x4b7   : > { %1388 = vst.msk [vmem:[%s1942_s13 + $0x160] sm:$0xff] %vm1343_vm3, %v1307_v3 }
 0x4b8   : > { %v1340_v60 = vpop.trf.xlu1 }
 0x4b9   : > { %1405 = vst.msk [vmem:[%s1942_s13 + $0x1e8] sm:$0xff] %vm1343_vm3, %v1340_v60 }
 0x4ba   : > { %v1308_v61 = vpop.trf.xlu0 }
 0x4bb   : > { %1389 = vst.msk [vmem:[%s1942_s13 + $0x168] sm:$0xff] %vm1343_vm3, %v1308_v61 }
 0x4bc   : > { %v1341_v62 = vpop.trf.xlu1 }
 0x4bd   : > { %1406 = vst.msk [vmem:[%s1942_s13 + $0x1f0] sm:$0xff] %vm1343_vm3, %v1341_v62 }
 0x4be   : > { %v1309_v63 = vpop.trf.xlu0 }
 0x4bf   : > { %1390 = vst.msk [vmem:[%s1942_s13 + $0x170] sm:$0xff] %vm1343_vm3, %v1309_v63 }
 0x4c0   : > { %v1342_v0 = vpop.trf.xlu1 }
 0x4c1   : > { %1407 = vst.msk [vmem:[%s1942_s13 + $0x1f8] sm:$0xff] %vm1343_vm3, %v1342_v0 }
 0x4c2   : > { %v1310_v1 = vpop.trf.xlu0 }
 0x4c3   : > { %1391 = vst.msk [vmem:[%s1942_s13 + $0x178] sm:$0xff] %vm1343_vm3, %v1310_v1 }
 0x4c4 PF: > { %s19_s30 = sadd.s32 1, %s1567_s30  }
 0x4c5   : > { %p16_p5 = scmp.ge.s32.totalorder %s19_s30, 4  }
 0x4c7   :  { %18 = sbr.rel (!%p16_p5) target bundleno = 1 (0x1), region = 86 }

</bundles_post_ra>
